<compile_context>
chip_gen: v5e
topology: v5e:2x2
jax: 0.10.0
libtpu: 0.0.40
codegen_flags: <defaults>
</compile_context>

<pallas_src>
import functools

import jax
import jax.numpy as jnp
from jax.experimental import pallas as pl
from jax.experimental.pallas import tpu as pltpu


def _rup8(x):
    return ((x + 7) // 8) * 8


# ----------------------------------------------------------------------------
# Pallas kernel: fused 3-layer MLP (Linear-ReLU-Linear-ReLU-Linear) with the
# style/class concat folded into the first matmul and one packed params slab.
# ----------------------------------------------------------------------------
def _decoder_kernel(*refs, S, L, H, O, o2, o3, ob, has_style):
    if has_style:
        style_ref, class_ref, p_ref, out_ref = refs
    else:
        class_ref, p_ref, out_ref = refs

    p = p_ref[...]                       # (R, C) packed params (VMEM-resident)
    w1 = p[0:L, 0:H]                     # (L, H)
    w2 = p[o2:o2 + H, 0:H]               # (H, H)
    w3 = p[o3:o3 + H, 0:O]               # (H, O)
    b1 = p[ob + 0:ob + 1, 0:H]           # (1, H)
    b2 = p[ob + 1:ob + 2, 0:H]           # (1, H)
    b3 = p[ob + 2:ob + 3, 0:O]           # (1, O)

    if has_style:
        # z = concat([style, class], axis=1)
        #   => z @ w1 == style @ w1[:S] + class @ w1[S:]
        h1 = jnp.dot(style_ref[...], w1[:S], preferred_element_type=jnp.float32)
        h1 = h1 + jnp.dot(class_ref[...], w1[S:L],
                          preferred_element_type=jnp.float32)
    else:
        h1 = jnp.dot(class_ref[...], w1, preferred_element_type=jnp.float32)
    h1 = jnp.maximum(h1 + b1, 0.0)                                   # ReLU

    h2 = jnp.maximum(
        jnp.dot(h1, w2, preferred_element_type=jnp.float32) + b2, 0.0)

    h3 = jnp.dot(h2, w3, preferred_element_type=jnp.float32) + b3
    out_ref[...] = h3.astype(out_ref.dtype)


# ----------------------------------------------------------------------------
# Wrapper: batch-tiled pallas_call; params pinned resident via constant index_map
# ----------------------------------------------------------------------------
def decoder_forward(style, cls, packed, *, S, L, H, O, o2, o3, ob, factorized):
    acts = (style, cls) if factorized else (cls,)
    B = cls.shape[0]
    # Batch tile: full batch for small B, else 256-row (8-aligned) tiles —
    # comfortably within v7x's 64 MiB VMEM with double-buffering.
    TB = B if B <= 256 else 256
    grid = (pl.cdiv(B, TB),)
    R, C = packed.shape

    act_specs = [pl.BlockSpec((TB, a.shape[1]), lambda i: (i, 0)) for a in acts]
    param_spec = pl.BlockSpec((R, C), lambda i: (0, 0))  # resident across grid
    out_spec = pl.BlockSpec((TB, O), lambda i: (i, 0))

    kernel = functools.partial(
        _decoder_kernel, S=S, L=L, H=H, O=O, o2=o2, o3=o3, ob=ob,
        has_style=factorized)

    return pl.pallas_call(
        kernel,
        out_shape=jax.ShapeDtypeStruct((B, O), cls.dtype),
        grid=grid,
        in_specs=act_specs + [param_spec],
        out_specs=out_spec,
        compiler_params=pltpu.CompilerParams(
            dimension_semantics=("parallel",)),  # v7x: shard batch over 2 TCs
    )(*acts, packed)


# ----------------------------------------------------------------------------
# DecoderAction forward
# ----------------------------------------------------------------------------
class DecoderActionPallas:
    def __init__(self, *, factorized_representation, class_dim, style_dim, dim,
                 output_dim, key):
        self.factorized_representation = factorized_representation
        self.style_dim = style_dim
        self.latent_dim = class_dim + style_dim
        self.hidden_dim = dim
        self.output_dim = output_dim

        # Deterministic init mimicking PyTorch nn.Linear default
        # (uniform in +/- 1/sqrt(fan_in)); weights stored as (in, out).
        ks = jax.random.split(key, 6)

        def uinit(k, shape, fan_in):
            bound = 1.0 / jnp.sqrt(jnp.float32(fan_in))
            return jax.random.uniform(k, shape, jnp.float32, -bound, bound)

        L, H, O = self.latent_dim, self.hidden_dim, self.output_dim
        self.w1 = uinit(ks[0], (L, H), L)
        self.b1 = uinit(ks[1], (1, H), L)
        self.w2 = uinit(ks[2], (H, H), H)
        self.b2 = uinit(ks[3], (1, H), H)
        self.w3 = uinit(ks[4], (H, O), H)
        self.b3 = uinit(ks[5], (1, O), H)

        # Pack params once into a single (R, C) slab (8-row-aligned sections)
        # => exactly one parameter DMA per kernel call.
        C = max(H, O)
        o2 = _rup8(L)
        o3 = o2 + _rup8(H)
        ob = o3 + _rup8(H)
        R = ob + 8
        p = jnp.zeros((R, C), jnp.float32)
        p = p.at[0:L, 0:H].set(self.w1)
        p = p.at[o2:o2 + H, 0:H].set(self.w2)
        p = p.at[o3:o3 + H, 0:O].set(self.w3)
        p = p.at[ob + 0, 0:H].set(self.b1[0])
        p = p.at[ob + 1, 0:H].set(self.b2[0])
        p = p.at[ob + 2, 0:O].set(self.b3[0])
        self.packed = p
        self._offsets = (o2, o3, ob)

    def __call__(self, style_latent_space, class_latent_space):
        o2, o3, ob = self._offsets
        x_hat = decoder_forward(
            style_latent_space, class_latent_space, self.packed,
            S=self.style_dim, L=self.latent_dim, H=self.hidden_dim,
            O=self.output_dim, o2=o2, o3=o3, ob=ob,
            factorized=self.factorized_representation)
        return x_hat, jnp.float32(0.75)


# ----------------------------------------------------------------------------
# Reference (pure JAX) for a sanity check
# ----------------------------------------------------------------------------
def _reference(mod, style, cls):
    z = (jnp.concatenate((style, cls), axis=1)
         if mod.factorized_representation else cls)
    h1 = jnp.maximum(z @ mod.w1 + mod.b1, 0.0)
    h2 = jnp.maximum(h1 @ mod.w2 + mod.b2, 0.0)
    return h2 @ mod.w3 + mod.b3


if __name__ == "__main__":
    key = jax.random.PRNGKey(0)
    k_params, k_style, k_class = jax.random.split(key, 3)

    # Small shapes consistent with the module:
    #   flags.class_dim=16, flags.style_dim=16 -> latent_dim=32
    #   flags.dim=32 (hidden), output_dim=8, batch=8
    batch, class_dim, style_dim, hidden_dim, output_dim = 8, 16, 16, 32, 8

    mod = DecoderActionPallas(
        factorized_representation=True,
        class_dim=class_dim,
        style_dim=style_dim,
        dim=hidden_dim,
        output_dim=output_dim,
        key=k_params,
    )

    style_latent = jax.random.normal(k_style, (batch, style_dim), jnp.float32)
    class_latent = jax.random.normal(k_class, (batch, class_dim), jnp.float32)

    x_hat, scale = mod(style_latent, class_latent)
    x_hat = jax.block_until_ready(x_hat)

    ref = _reference(mod, style_latent, class_latent)
    assert x_hat.shape == (batch, output_dim)
    assert jnp.allclose(x_hat, ref, atol=1e-5, rtol=1e-5)
    assert float(scale) == 0.75

    print("KERNEL_OK")
</pallas_src>

<mosaic_0001>
module attributes {stable_mosaic.version = 11 : i64} {
  func.func @_decoder_kernel(%arg0: i32, %arg1: memref<8x16xf32, #tpu.memory_space<vmem>>, %arg2: memref<8x16xf32, #tpu.memory_space<vmem>>, %arg3: memref<104x32xf32, #tpu.memory_space<vmem>>, %arg4: memref<8x8xf32, #tpu.memory_space<vmem>>) attributes {dimension_semantics = [#tpu.dimension_semantics<parallel>], iteration_bounds = array<i64: 1>, scalar_prefetch = 0 : i64, scratch_operands = 0 : i64, tpu.core_type = #tpu.core_type<tc>, window_params = [{transform_indices = @transform_0, window_bounds = array<i64: 8, 16>}, {transform_indices = @transform_1, window_bounds = array<i64: 8, 16>}, {pipeline_mode = #tpu.pipeline_mode<synchronous>, transform_indices = @transform_2, window_bounds = array<i64: 104, 32>}, {transform_indices = @transform_3, window_bounds = array<i64: 8, 8>}]} {
    %c0 = arith.constant 0 : index
    %c0_0 = arith.constant 0 : index
    %0 = vector.load %arg3[%c0, %c0_0] : memref<104x32xf32, #tpu.memory_space<vmem>>, vector<104x32xf32>
    %1 = vector.extract_strided_slice %0 {offsets = [0, 0], sizes = [32, 32], strides = [1, 1]} : vector<104x32xf32> to vector<32x32xf32>
    %2 = vector.extract_strided_slice %0 {offsets = [32, 0], sizes = [32, 32], strides = [1, 1]} : vector<104x32xf32> to vector<32x32xf32>
    %3 = vector.extract_strided_slice %0 {offsets = [64, 0], sizes = [32, 8], strides = [1, 1]} : vector<104x32xf32> to vector<32x8xf32>
    %4 = vector.extract_strided_slice %0 {offsets = [96, 0], sizes = [1, 32], strides = [1, 1]} : vector<104x32xf32> to vector<1x32xf32>
    %5 = vector.extract_strided_slice %0 {offsets = [97, 0], sizes = [1, 32], strides = [1, 1]} : vector<104x32xf32> to vector<1x32xf32>
    %6 = vector.extract_strided_slice %0 {offsets = [98, 0], sizes = [1, 8], strides = [1, 1]} : vector<104x32xf32> to vector<1x8xf32>
    %c0_1 = arith.constant 0 : index
    %c0_2 = arith.constant 0 : index
    %7 = vector.load %arg1[%c0_1, %c0_2] : memref<8x16xf32, #tpu.memory_space<vmem>>, vector<8x16xf32>
    %8 = vector.extract_strided_slice %1 {offsets = [0, 0], sizes = [16, 32], strides = [1, 1]} : vector<32x32xf32> to vector<16x32xf32>
    %cst = arith.constant dense<0.000000e+00> : vector<8x32xf32>
    %9 = tpu.matmul %7, %8, %cst {dimension_numbers = #tpu.dot_dimension_numbers<[1], [0], [0], [1], [0, 0, 1, 1], [], []>} : vector<8x16xf32>, vector<16x32xf32>, vector<8x32xf32> -> vector<8x32xf32>
    %c0_3 = arith.constant 0 : index
    %c0_4 = arith.constant 0 : index
    %10 = vector.load %arg2[%c0_3, %c0_4] : memref<8x16xf32, #tpu.memory_space<vmem>>, vector<8x16xf32>
    %11 = vector.extract_strided_slice %1 {offsets = [16, 0], sizes = [16, 32], strides = [1, 1]} : vector<32x32xf32> to vector<16x32xf32>
    %cst_5 = arith.constant dense<0.000000e+00> : vector<8x32xf32>
    %12 = tpu.matmul %10, %11, %cst_5 {dimension_numbers = #tpu.dot_dimension_numbers<[1], [0], [0], [1], [0, 0, 1, 1], [], []>} : vector<8x16xf32>, vector<16x32xf32>, vector<8x32xf32> -> vector<8x32xf32>
    %13 = arith.addf %9, %12 : vector<8x32xf32>
    %14 = vector.broadcast %4 : vector<1x32xf32> to vector<8x32xf32>
    %15 = arith.addf %13, %14 : vector<8x32xf32>
    %cst_6 = arith.constant 0.000000e+00 : f32
    %16 = vector.broadcast %cst_6 : f32 to vector<8x32xf32>
    %17 = arith.maximumf %15, %16 : vector<8x32xf32>
    %cst_7 = arith.constant dense<0.000000e+00> : vector<8x32xf32>
    %18 = tpu.matmul %17, %2, %cst_7 {dimension_numbers = #tpu.dot_dimension_numbers<[1], [0], [0], [1], [0, 0, 1, 1], [], []>} : vector<8x32xf32>, vector<32x32xf32>, vector<8x32xf32> -> vector<8x32xf32>
    %19 = vector.broadcast %5 : vector<1x32xf32> to vector<8x32xf32>
    %20 = arith.addf %18, %19 : vector<8x32xf32>
    %cst_8 = arith.constant 0.000000e+00 : f32
    %21 = vector.broadcast %cst_8 : f32 to vector<8x32xf32>
    %22 = arith.maximumf %20, %21 : vector<8x32xf32>
    %cst_9 = arith.constant dense<0.000000e+00> : vector<8x8xf32>
    %23 = tpu.matmul %22, %3, %cst_9 {dimension_numbers = #tpu.dot_dimension_numbers<[1], [0], [0], [1], [0, 0, 1, 1], [], []>} : vector<8x32xf32>, vector<32x8xf32>, vector<8x8xf32> -> vector<8x8xf32>
    %24 = vector.broadcast %6 : vector<1x8xf32> to vector<8x8xf32>
    %25 = arith.addf %23, %24 : vector<8x8xf32>
    %c0_10 = arith.constant 0 : index
    %c0_11 = arith.constant 0 : index
    %26 = vector.load %arg4[%c0_10, %c0_11] : memref<8x8xf32, #tpu.memory_space<vmem>>, vector<8x8xf32>
    tpu.vector_store %arg4[%c0_10, %c0_11], %25 {strides = array<i32>} : memref<8x8xf32, #tpu.memory_space<vmem>>, vector<8x8xf32>,
    return
  }
  func.func @transform_0(%arg0: i32) -> (i32, i32) {
    %c0_i32 = arith.constant 0 : i32
    %c0_i32_0 = arith.constant 0 : i32
    return %arg0, %c0_i32 : i32, i32
  }
  func.func @transform_1(%arg0: i32) -> (i32, i32) {
    %c0_i32 = arith.constant 0 : i32
    %c0_i32_0 = arith.constant 0 : i32
    return %arg0, %c0_i32 : i32, i32
  }
  func.func @transform_2(%arg0: i32) -> (i32, i32) {
    %c0_i32 = arith.constant 0 : i32
    %c0_i32_0 = arith.constant 0 : i32
    %c0_i32_1 = arith.constant 0 : i32
    return %c0_i32, %c0_i32_0 : i32, i32
  }
  func.func @transform_3(%arg0: i32) -> (i32, i32) {
    %c0_i32 = arith.constant 0 : i32
    %c0_i32_0 = arith.constant 0 : i32
    return %arg0, %c0_i32 : i32, i32
  }
}

</mosaic_0001>

<bundles_post_ra>
// kernel: tpu_custom_call.1
= control target key start
LH: loop header
LB: loop body
LE: loop exit
PB: predicated region body
PF: predicated region fallthrough
CT: control target
= control target key end

     0   :  { %vm30_vm0 = vcmask 130048   ;;  %s248_s0 = inlined_call_operand.vmem [shape: f32[8,16], index: 0, kind: input, shape index: {}]   ;;  %s249_s1 = inlined_call_operand.vmem [shape: f32[8,16], index: 1, kind: input, shape index: {}]   ;;  %s250_s2 = inlined_call_operand.vmem [shape: f32[104,32], index: 2, kind: input, shape index: {}]   ;;  %s251_s3 = inlined_call_operand.hbm [shape: f32[8,8], index: 3, kind: output, shape index: {}]  }
   0x1   :  { %v18_v0 = vld [vmem:[%s250_s2 + $0x18] sm:$0xff]  ;;  %v16_v1 = vld [vmem:[%s250_s2 + $0x8] sm:$0xff]  ;;  %v17_v2 = vld [vmem:[%s250_s2 + $0x10] sm:$0xff] }
   0x2   :  { %48 = vmatpush.msra.mxu0 %v18_v0  ;;  %71 = vmatpush.msra.mxu1 %v16_v1  ;;  %v15_v3 = vld [vmem:[%s250_s2] sm:$0xff] }
   0x3   :  { %v29_v4 = vld [vmem:[%s249_s1] sm:$0xff] }
   0x4   :  { %v28_v5 = vld [vmem:[%s248_s0] sm:$0xff] }
   0x5   :  { %8 = vsyncpa [#allocation3], 0  ;;  %49 = vmatpush.msra.mxu0 %v17_v2  ;;  %72 = vmatpush.msra.mxu1 %v15_v3  ;;  %v22_v6 = vld [vmem:[%s250_s2 + $0x38] sm:$0xff]  ;;  %v21_v7 = vld [vmem:[%s250_s2 + $0x30] sm:$0xff]  ;;  %vm81_vm1 = vcmask 261120   ;;  %s179_s13 = smov [#allocation2]  }
   0x6   :  { %148 = vmatmul.msk.f32.vlgmr.msra.gmra.mxu0 %vm30_vm0, %v29_v4  ;;  %149 = vmatmul.msk.f32.vlgmr.msra.gmra.mxu1 %vm30_vm0, %v28_v5  ;;  %v20_v8 = vld [vmem:[%s250_s2 + $0x28] sm:$0xff]  ;;  %v19_v9 = vld [vmem:[%s250_s2 + $0x20] sm:$0xff]  ;;  %v26_v10 = vld [vmem:[%s250_s2 + $0x58] sm:$0xff]  ;;  %s137_s14 = sshll.u32 %s179_s13, 4  ;;  %s139_s17 = sshll.u32 %s251_s3, 4  ;;  %vm130_vm2 = vcmask 64512   ;;  %s138_s14 = int_to_ptr.vmem [resolvable:$true] %s137_s14  ;;  %s140_s17 = int_to_ptr.hbm [resolvable:$true] %s139_s17 }
   0x7   :  { %97 = vmatpush.msra.mxu2 %v22_v6  ;;  %122 = vmatpush.msra.mxu3 %v26_v10  ;;  %v27_v11 = vld [vmem:[%s250_s2 + $0x60] sm:$0xff]  ;;  %v25_v18 = vld [vmem:[%s250_s2 + $0x50] sm:$0xff]  ;;  %v24_v19 = vld [vmem:[%s250_s2 + $0x48] sm:$0xff] }
   0x8   :  { %v77_v12 = vperm.slane %v27_v11, 0  ;;  %v23_v20 = vld [vmem:[%s250_s2 + $0x40] sm:$0xff]  ;;  %v80_v21 = vperm.slane %v27_v11, 1  ;;  %v106_v25 = vperm.slane %v27_v11, 2 }
   0x9   :  { %98 = vmatpush.msra.mxu2 %v21_v7  ;;  %123 = vmatpush.msra.mxu3 %v25_v18 }
   0xb   :  { %99 = vmatpush.msra.mxu2 %v20_v8  ;;  %124 = vmatpush.msra.mxu3 %v24_v19 }
   0xd   :  { %100 = vmatpush.msra.mxu2 %v19_v9  ;;  %125 = vmatpush.msra.mxu3 %v23_v20 }
  0x83   :  { %v51_v13 = vpop.f32.mrf.mxu0  ;;  %v74_v14 = vpop.f32.mrf.mxu1 }
  0x84   :  { %v75_v15 = vadd.f32 %v74_v14, %v51_v13 }
  0x86   :  { %v78_v16 = vadd.f32 %v77_v12, %v75_v15 }
  0x88   :  { %v79_v17 = vmax.f32 %v78_v16, 0.0 }
  0x8a   :  { %150 = vmatmul.msk.f32.vlgmr.msra.gmra.mxu2 %vm81_vm1, %v79_v17 }
 0x10d   :  { %v102_v22 = vpop.f32.mrf.mxu2 }
 0x10e   :  { %v103_v23 = vadd.f32 %v102_v22, %v80_v21 }
 0x110   :  { %v105_v24 = vmax.f32 %v103_v23, 0.0 }
 0x112   :  { %151 = vmatmul.msk.f32.vlgmr.msra.gmra.mxu3 %vm81_vm1, %v105_v24 }
 0x195   :  { %v127_v26 = vpop.f32.mrf.mxu3 }
 0x196   :  { %v128_v27 = vadd.f32 %v127_v26, %v106_v25 }
 0x198   :  { %131 = vst.msk [vmem:[#allocation2] sm:$0xff] %vm130_vm2, %v128_v27 }
 0x199   :  { %142 = dma.vmem_to_hbm [thread:$0]  %s138_s14, 128, %s140_s17, [#allocation3]  }
 0x19a   :  { %177 = dma.done.wait [#allocation3], 128  }
 0x19b   :  { %178 = vsyncadd [#allocation3], 4294967168 }
 0x19c   :  { %147 = vsyncpa [#allocation3], 1 }

</bundles_post_ra>
